<compile_context>
chip_gen: v7x
topology: tpu7x:2x2x1
jax: 0.10.0
libtpu: 0.0.40
codegen_flags: <defaults>
</compile_context>

<pallas_src>
import jax
import jax.numpy as jnp
from jax.experimental import pallas as pl
from jax.experimental.pallas import tpu as pltpu


_LANE = 128
_ROW_ALIGN = 32                        # sublane-aligned for f32/bf16/int8
_TARGET_BLOCK_BYTES = 2 * 1024 * 1024  # ~2 MiB/block -> ~8 MiB VMEM double-buffered
_VMEM_LIMIT_BYTES = 32 * 1024 * 1024   # explicit, safe on v5e/v6e/v7x


def _view_copy_kernel(x_ref, o_ref):
    # Identity copy of the current (tile_rows, width) tile.
    o_ref[...] = x_ref[...]


def _pick_copy_width(total: int):
    """Largest lane-dense width (multiple of 128) that divides the element count."""
    for cand in (8 * _LANE, 4 * _LANE, 2 * _LANE, _LANE):
        if total % cand == 0:
            return cand
    return None


def _pick_tile_rows(num_rows: int, row_bytes: int) -> int:
    """Row tile targeting ~_TARGET_BLOCK_BYTES, multiple of 32, capped at num_rows."""
    tr = (_TARGET_BLOCK_BYTES // max(row_bytes, 1)) // _ROW_ALIGN * _ROW_ALIGN
    tr = max(tr, _ROW_ALIGN)
    if tr >= num_rows:
        return num_rows            # whole extent in one block (small arrays only)
    return tr                      # => grid has >= 2 steps, edge block masked


def _copy_2d(x2d):
    rows, width = x2d.shape
    itemsize = jnp.dtype(x2d.dtype).itemsize
    tr = _pick_tile_rows(rows, width * itemsize)
    grid = (pl.cdiv(rows, tr),)

    return pl.pallas_call(
        _view_copy_kernel,
        out_shape=jax.ShapeDtypeStruct((rows, width), x2d.dtype),
        grid_spec=pltpu.PrefetchScalarGridSpec(
            num_scalar_prefetch=0,
            grid=grid,
            in_specs=[pl.BlockSpec((tr, width), lambda i: (i, 0))],
            out_specs=pl.BlockSpec((tr, width), lambda i: (i, 0)),
        ),
        compiler_params=pltpu.CompilerParams(
            dimension_semantics=("parallel",),
            vmem_limit_bytes=_VMEM_LIMIT_BYTES,
        ),
        cost_estimate=pl.CostEstimate(
            flops=0,
            transcendentals=0,
            bytes_accessed=2 * rows * width * itemsize,
        ),
    )(x2d)


def view_pallas(x, size: int):
    """Equivalent of torch.Tensor.view(-1, size); data movement done by Pallas."""
    total = 1
    for d in x.shape:
        total *= d
    assert total % size == 0, "total number of elements must be divisible by size"
    rows = total // size

    # Lane-dense copy layout, independent of `size` (row-major order preserved).
    width = _pick_copy_width(total)
    if width is not None:
        slab = jnp.reshape(x, (total // width, width))
    else:
        # Element count not a multiple of 128: fall back to the logical layout
        # (full-extent last dim satisfies the block rule; edge stores masked).
        slab = jnp.reshape(x, (rows, size))

    out = _copy_2d(slab)
    # Final reshape to the user-visible shape is metadata-only (contiguous).
    return jnp.reshape(out, (rows, size))


if __name__ == "__main__":
    key = jax.random.PRNGKey(0)

    # Module config: View(size=128). No parameters.
    size = 128

    # Primary check: NCHW input (2, 4, 16, 16) -> 2048 elems -> output (16, 128).
    x = jax.random.normal(key, (2, 4, 16, 16), dtype=jnp.float32)
    y = jax.block_until_ready(view_pallas(x, size))
    ref = jnp.reshape(x, (-1, size))
    assert y.shape == ref.shape and y.dtype == ref.dtype
    assert bool(jnp.array_equal(y, ref))

    # Secondary check: exercises multi-step grid + masked edge block
    # (total = 688128 -> slab (672, 1024), tile_rows = 512, grid = 2).
    k2 = jax.random.split(key)[0]
    x2 = jax.random.normal(k2, (6, 7, 128, 128), dtype=jnp.float32)
    y2 = jax.block_until_ready(view_pallas(x2, size))
    ref2 = jnp.reshape(x2, (-1, size))
    assert y2.shape == ref2.shape and bool(jnp.array_equal(y2, ref2))

    # Tertiary check: size < 128 still uses a lane-dense copy layout
    # (total = 1536 -> slab (3, 512) -> reshape to (16, 96)).
    k3 = jax.random.split(key)[1]
    x3 = jax.random.normal(k3, (2, 4, 16, 12), dtype=jnp.float32)
    y3 = jax.block_until_ready(view_pallas(x3, 96))
    ref3 = jnp.reshape(x3, (-1, 96))
    assert y3.shape == ref3.shape and bool(jnp.array_equal(y3, ref3))

    print("KERNEL_OK")
</pallas_src>

<mosaic_0001>
module attributes {stable_mosaic.version = 11 : i64} {
  func.func @_view_copy_kernel(%arg0: i32, %arg1: memref<2x1024xf32, #tpu.memory_space<vmem>>, %arg2: memref<2x1024xf32, #tpu.memory_space<vmem>>) attributes {dimension_semantics = [#tpu.dimension_semantics<parallel>], iteration_bounds = array<i64: 1>, scalar_prefetch = 0 : i64, scratch_operands = 0 : i64, tpu.core_type = #tpu.core_type<tc>, window_params = [{transform_indices = @transform_0, window_bounds = array<i64: 2, 1024>}, {transform_indices = @transform_1, window_bounds = array<i64: 2, 1024>}]} {
    %c0 = arith.constant 0 : index
    %c0_0 = arith.constant 0 : index
    %0 = vector.load %arg1[%c0, %c0_0] : memref<2x1024xf32, #tpu.memory_space<vmem>>, vector<2x1024xf32>
    %c0_1 = arith.constant 0 : index
    %c0_2 = arith.constant 0 : index
    %1 = vector.load %arg2[%c0_1, %c0_2] : memref<2x1024xf32, #tpu.memory_space<vmem>>, vector<2x1024xf32>
    tpu.vector_store %arg2[%c0_1, %c0_2], %0 {strides = array<i32>} : memref<2x1024xf32, #tpu.memory_space<vmem>>, vector<2x1024xf32>,
    return
  }
  func.func @transform_0(%arg0: i32) -> (i32, i32) {
    %c0_i32 = arith.constant 0 : i32
    %c0_i32_0 = arith.constant 0 : i32
    return %arg0, %c0_i32 : i32, i32
  }
  func.func @transform_1(%arg0: i32) -> (i32, i32) {
    %c0_i32 = arith.constant 0 : i32
    %c0_i32_0 = arith.constant 0 : i32
    return %arg0, %c0_i32 : i32, i32
  }
}

</mosaic_0001>

<bundles_post_ra>
// kernel: tpu_custom_call.1
= control target key start
LH: loop header
LB: loop body
LE: loop exit
PB: predicated region body
PF: predicated region fallthrough
CT: control target
= control target key end

     0   :  { %6 = vsyncpa [#allocation3], 0  ;;  %s126_s0 = inlined_call_operand.hbm [shape: f32[2,1024], index: 0, kind: input, shape index: {}]   ;;  %s127_s1 = inlined_call_operand.hbm [shape: f32[2,1024], index: 1, kind: output, shape index: {}]  }
   0x1   :  { %7 = vsyncpa [#allocation4], 0  ;;  %s90_s6 = smov [#allocation2]   ;;  %s42_s10 = scalar_lea.hbm %s126_s0, 256 }
   0x2   :  { %s14_s7 = sshll.u32 %s90_s6, 4  ;;  %p43_p0 = scmp.ne.s32.totalorder %s126_s0, %s42_s10  ;;  %s15_s7 = int_to_ptr.vmem [resolvable:$true] %s14_s7 }
   0x3   :  { %p46_p1 = scmp.lt.u32.totalorder %s42_s10, %s126_s0 }
   0x5   :  { %p48_p2 = pnand %p46_p1, %p43_p0 }
   0x7   :  { %51 = shalt.err (!%p48_p2)
}
   0x8   :  { %s52_s15 = scalar_lea.vmem %s15_s7, 256  ;;  %p57_p4 = scmp.lt.s32.totalorder %s15_s7, %s15_s7 }
   0x9   :  { %p53_p3 = scmp.ne.s32.totalorder %s15_s7, %s52_s15  ;;  %p58_p5 = scmp.lt.s32.totalorder %s52_s15, %s52_s15 }
   0xb   :  { %p59_p6 = por %p58_p5, %p57_p4 }
   0xd   :  { %p60_p7 = pnand %p59_p6, %p53_p3 }
   0xf   :  { %63 = shalt.err (!%p60_p7)
}
  0x10   :  { %17 = dma.hbm_to_vmem [thread:$0]  %s126_s0, 256, %s15_s7, [#allocation3]  }
  0x11   :  { %86 = dma.done.wait [#allocation3], 256  }
  0x12   :  { %87 = vsyncadd [#allocation3], 4294967040  ;;  %s91_s18 = smov [#allocation5]   ;;  %v21_v0 = vld [vmem:[#allocation2] sm:$0xff]  ;;  %v22_v1 = vld [vmem:[#allocation2 + $0x8] sm:$0xff] }
  0x13   :  { %s31_s19 = sshll.u32 %s91_s18, 4  ;;  %23 = vst [vmem:[#allocation5] sm:$0xff] %v21_v0  ;;  %24 = vst [vmem:[#allocation5 + $0x8] sm:$0xff] %v22_v1  ;;  %s32_s19 = int_to_ptr.vmem [resolvable:$true] %s31_s19 }
  0x14   :  { %s64_s20 = scalar_lea.vmem %s32_s19, 256  ;;  %p69_p9 = scmp.lt.s32.totalorder %s32_s19, %s32_s19 }
  0x15   :  { %p65_p8 = scmp.ne.s32.totalorder %s32_s19, %s64_s20  ;;  %p70_p10 = scmp.lt.s32.totalorder %s64_s20, %s64_s20 }
  0x17   :  { %p71_p11 = por %p70_p10, %p69_p9 }
  0x19   :  { %p72_p12 = pnand %p71_p11, %p65_p8 }
  0x1b   :  { %75 = shalt.err (!%p72_p12)
}
  0x1c   :  { %s76_s0 = scalar_lea.hbm %s127_s1, 256 }
  0x1d   :  { %p77_p13 = scmp.ne.s32.totalorder %s127_s1, %s76_s0  ;;  %p80_p0 = scmp.lt.u32.totalorder %s76_s0, %s127_s1 }
  0x1f   :  { %p82_p1 = pnand %p80_p0, %p77_p13 }
  0x21   :  { %85 = shalt.err (!%p82_p1)
}
  0x22   :  { %34 = dma.vmem_to_hbm [thread:$0]  %s32_s19, 256, %s127_s1, [#allocation4]  }
  0x23   :  { %88 = dma.done.wait [#allocation4], 256  }
  0x24   :  { %89 = vsyncadd [#allocation4], 4294967040 }
  0x25   :  { %38 = vsyncpa [#allocation3], 1 }
  0x26   :  { %39 = vsyncpa [#allocation4], 1 }

</bundles_post_ra>
